<compile_context>
chip_gen: v7x
topology: tpu7x:2x2x1
jax: 0.10.0
libtpu: 0.0.40
codegen_flags: <defaults>
</compile_context>

<pallas_src>
import functools

import jax
import jax.numpy as jnp
from jax.experimental import pallas as pl
from jax.experimental.pallas import tpu as pltpu

_LANES = 128
_SUBLANES = 8


def _si_loss_kernel(prob_ref, out_ref, *, inv_c, inv_cm1):
    t = pl.program_id(1)  # reduction step within this parallel chunk

    @pl.when(t == 0)
    def _():
        out_ref[...] = jnp.zeros_like(out_ref)

    x = prob_ref[...].astype(jnp.float32)          # [B, C, TR, 128], f32 math
    s = jnp.sum(x, axis=1)                         # [B, TR, 128]
    ss = jnp.sum(x * x, axis=1)                    # [B, TR, 128]
    var = (ss - s * s * inv_c) * inv_cm1           # unbiased, single-pass
    var = jnp.maximum(var, 0.0)                    # guard f32 cancellation
    std = jnp.sqrt(var)                            # [B, TR, 128]  (EUP)

    # Accumulate per-lane partial sums (summed over batch) across the chunk.
    out_ref[...] += jnp.sum(std, axis=0, keepdims=True)   # [1, TR, 128]


def source_inconsistency_loss(prob, th_max=0.1, *, tile_bytes=8 * 1024 * 1024,
                              num_parallel=1, rows_per_tile=None,
                              force_kernel=False):
    """prob: [B, C, N] float array (f32 or bf16). Returns scalar f32 loss.

    th_max is unused in the PyTorch forward pass (kept for API parity).
    num_parallel: set 2 on v7x (dual TensorCore); leave 1 on v5e / v6e.
    """
    del th_max
    prob = jnp.asarray(prob)
    B, C, N = prob.shape

    # Fast path: tiny problems (or degenerate C, where torch.std -> NaN) are
    # cheaper as one fused XLA expression than a kernel launch + grid step.
    small = B * C * N * prob.dtype.itemsize < (512 * 1024)
    if C < 2 or (small and not force_kernel):
        return jnp.mean(jnp.std(prob.astype(jnp.float32), axis=1, ddof=1))

    rows = pl.cdiv(N, _LANES)                      # rows of 128 lanes over N

    # --- rows per tile: dtype-aware HBM byte target, f32 working-set cap ----
    if rows_per_tile is None:
        row_bytes = B * C * _LANES * prob.dtype.itemsize   # streamed bytes/row
        tr = max(_SUBLANES, tile_bytes // row_bytes)
        # Keep the f32 copy of one tile <= 16 MiB so double-buffered input +
        # f32 temps stay well inside v7x's 64 MiB per-TC VMEM.
        tr = min(tr, (16 * 1024 * 1024) // (B * C * _LANES * 4))
        tr = max(_SUBLANES, (tr // _SUBLANES) * _SUBLANES)
    else:
        tr = max(_SUBLANES, (rows_per_tile // _SUBLANES) * _SUBLANES)
    tr = min(tr, pl.cdiv(rows, _SUBLANES) * _SUBLANES)     # don't exceed data
    # TODO(synk): also tile the batch/source axes if B*C ever grows so large
    # that even an 8-row tile no longer fits the VMEM budget.

    total_tiles = pl.cdiv(rows, tr)
    num_par = max(1, min(num_parallel, total_tiles))
    tiles_per_par = pl.cdiv(total_tiles, num_par)

    # Zero-pad N so every (chunk, step) maps to a distinct full tile.  Zero
    # lanes have std == 0, so they add nothing to the sum -> no in-kernel
    # masking and no clamped-overhang re-reads.
    rows_pad = num_par * tiles_per_par * tr
    n_pad = rows_pad * _LANES
    if n_pad != N:
        prob = jnp.pad(prob, ((0, 0), (0, 0), (0, n_pad - N)))
    # Metadata-only reshape in HBM: lane-dense 4D layout so every vreg in the
    # kernel is fully packed (C no longer pads the sublane axis).
    prob4 = prob.reshape(B, C, rows_pad, _LANES)

    kernel = functools.partial(
        _si_loss_kernel, inv_c=1.0 / C, inv_cm1=1.0 / (C - 1))

    partials = pl.pallas_call(
        kernel,
        out_shape=jax.ShapeDtypeStruct((num_par, tr, _LANES), jnp.float32),
        grid_spec=pltpu.PrefetchScalarGridSpec(
            num_scalar_prefetch=0,
            grid=(num_par, tiles_per_par),
            in_specs=[pl.BlockSpec(
                (B, C, tr, _LANES),
                lambda p, t: (0, 0, p * tiles_per_par + t, 0))],
            out_specs=pl.BlockSpec((1, tr, _LANES), lambda p, t: (p, 0, 0)),
        ),
        compiler_params=pltpu.CompilerParams(
            dimension_semantics=("parallel", "arbitrary"),
            vmem_limit_bytes=48 * 1024 * 1024,
        ),
    )(prob4)

    # Tiny final reduce in XLA: padded lanes contributed 0, divide by true B*N.
    return jnp.sum(partials) / jnp.float32(B * N)


if __name__ == "__main__":
    key = jax.random.PRNGKey(0)
    k1, k2, k3 = jax.random.split(key, 3)

    # Shapes implied by the module: batch=2, sources=4, spatial 16x16.
    B, C, H, W = 2, 4, 16, 16
    x = jax.random.uniform(k1, (B, C, H, W), dtype=jnp.float32)
    prob = x.reshape(B, C, H * W)                     # [2, 4, 256]

    loss = jax.block_until_ready(
        source_inconsistency_loss(prob, force_kernel=True))
    ref = jnp.mean(jnp.std(prob, axis=1, ddof=1))
    assert jnp.allclose(loss, ref, atol=1e-5, rtol=1e-4), (loss, ref)

    # Tiny-input fast path (no kernel launch) must agree too.
    loss_fast = jax.block_until_ready(source_inconsistency_loss(prob))
    assert jnp.allclose(loss_fast, ref, atol=1e-5, rtol=1e-4), (loss_fast, ref)

    # Multi-tile / parallel-chunk / lane-tail-padding path (N not 128-aligned).
    B2, C2, N2 = 2, 4, 4000
    prob2 = jax.random.uniform(k2, (B2, C2, N2), dtype=jnp.float32)
    loss2 = jax.block_until_ready(source_inconsistency_loss(
        prob2, rows_per_tile=8, num_parallel=2, force_kernel=True))
    ref2 = jnp.mean(jnp.std(prob2, axis=1, ddof=1))
    assert jnp.allclose(loss2, ref2, atol=1e-5, rtol=1e-4), (loss2, ref2)

    # bf16 streaming path (halves HBM bytes; compute stays f32).
    prob3 = jax.random.uniform(
        k3, (2, 4, 1536), dtype=jnp.float32).astype(jnp.bfloat16)
    loss3 = jax.block_until_ready(
        source_inconsistency_loss(prob3, force_kernel=True))
    ref3 = jnp.mean(jnp.std(prob3.astype(jnp.float32), axis=1, ddof=1))
    assert jnp.allclose(loss3, ref3, atol=1e-4, rtol=1e-3), (loss3, ref3)

    print("KERNEL_OK")
</pallas_src>

<mosaic_0001>
module attributes {stable_mosaic.version = 11 : i64} {
  func.func @_si_loss_kernel(%arg0: i32, %arg1: i32, %arg2: memref<2x4x8x128xf32, #tpu.memory_space<vmem>>, %arg3: memref<1x8x128xf32, #tpu.memory_space<vmem>>) attributes {dimension_semantics = [#tpu.dimension_semantics<parallel>, #tpu.dimension_semantics<arbitrary>], iteration_bounds = array<i64: 1, 1>, scalar_prefetch = 0 : i64, scratch_operands = 0 : i64, tpu.core_type = #tpu.core_type<tc>, window_params = [{transform_indices = @transform_0, window_bounds = array<i64: 2, 4, 8, 128>}, {transform_indices = @transform_1, window_bounds = array<i64: 1, 8, 128>}]} {
    %c0_i32 = arith.constant 0 : i32
    %0 = arith.cmpi eq, %arg1, %c0_i32 : i32
    %1 = arith.extui %0 : i1 to i32
    %c0_i32_0 = arith.constant 0 : i32
    %2 = arith.cmpi ne, %1, %c0_i32_0 : i32
    scf.if %2 {
      %cst_15 = arith.constant 0.000000e+00 : f32
      %21 = vector.broadcast %cst_15 : f32 to vector<1x8x128xf32>
      %c0_16 = arith.constant 0 : index
      %c0_17 = arith.constant 0 : index
      %c0_18 = arith.constant 0 : index
      %22 = vector.load %arg3[%c0_16, %c0_17, %c0_18] : memref<1x8x128xf32, #tpu.memory_space<vmem>>, vector<1x8x128xf32>
      tpu.vector_store %arg3[%c0_16, %c0_17, %c0_18], %21 {strides = array<i32>} : memref<1x8x128xf32, #tpu.memory_space<vmem>>, vector<1x8x128xf32>,
    } else {
    }
    %c0 = arith.constant 0 : index
    %c0_1 = arith.constant 0 : index
    %c0_2 = arith.constant 0 : index
    %c0_3 = arith.constant 0 : index
    %3 = vector.load %arg2[%c0, %c0_1, %c0_2, %c0_3] : memref<2x4x8x128xf32, #tpu.memory_space<vmem>>, vector<2x4x8x128xf32>
    %cst = arith.constant dense<0.000000e+00> : vector<2x8x128xf32>
    %4 = vector.multi_reduction <add>, %3, %cst [1] : vector<2x4x8x128xf32> to vector<2x8x128xf32>
    %5 = arith.mulf %3, %3 : vector<2x4x8x128xf32>
    %cst_4 = arith.constant dense<0.000000e+00> : vector<2x8x128xf32>
    %6 = vector.multi_reduction <add>, %5, %cst_4 [1] : vector<2x4x8x128xf32> to vector<2x8x128xf32>
    %7 = arith.mulf %4, %4 : vector<2x8x128xf32>
    %cst_5 = arith.constant 2.500000e-01 : f32
    %8 = vector.broadcast %cst_5 : f32 to vector<2x8x128xf32>
    %9 = arith.mulf %7, %8 : vector<2x8x128xf32>
    %10 = arith.subf %6, %9 : vector<2x8x128xf32>
    %cst_6 = arith.constant 0.333333343 : f32
    %11 = vector.broadcast %cst_6 : f32 to vector<2x8x128xf32>
    %12 = arith.mulf %10, %11 : vector<2x8x128xf32>
    %cst_7 = arith.constant 0.000000e+00 : f32
    %13 = vector.broadcast %cst_7 : f32 to vector<2x8x128xf32>
    %14 = arith.maximumf %12, %13 : vector<2x8x128xf32>
    %15 = math.sqrt %14 : vector<2x8x128xf32>
    %c0_8 = arith.constant 0 : index
    %c0_9 = arith.constant 0 : index
    %c0_10 = arith.constant 0 : index
    %16 = vector.load %arg3[%c0_8, %c0_9, %c0_10] : memref<1x8x128xf32, #tpu.memory_space<vmem>>, vector<1x8x128xf32>
    %cst_11 = arith.constant dense<0.000000e+00> : vector<8x128xf32>
    %17 = vector.multi_reduction <add>, %15, %cst_11 [0] : vector<2x8x128xf32> to vector<8x128xf32>
    %18 = vector.shape_cast %17 : vector<8x128xf32> to vector<1x8x128xf32>
    %19 = arith.addf %16, %18 : vector<1x8x128xf32>
    %c0_12 = arith.constant 0 : index
    %c0_13 = arith.constant 0 : index
    %c0_14 = arith.constant 0 : index
    %20 = vector.load %arg3[%c0_12, %c0_13, %c0_14] : memref<1x8x128xf32, #tpu.memory_space<vmem>>, vector<1x8x128xf32>
    tpu.vector_store %arg3[%c0_12, %c0_13, %c0_14], %19 {strides = array<i32>} : memref<1x8x128xf32, #tpu.memory_space<vmem>>, vector<1x8x128xf32>,
    return
  }
  func.func @transform_0(%arg0: i32, %arg1: i32) -> (i32, i32, i32, i32) {
    %c1_i32 = arith.constant 1 : i32
    %0 = arith.muli %arg0, %c1_i32 : i32
    %1 = arith.addi %0, %arg1 : i32
    %c0_i32 = arith.constant 0 : i32
    %c0_i32_0 = arith.constant 0 : i32
    %c0_i32_1 = arith.constant 0 : i32
    %c0_i32_2 = arith.constant 0 : i32
    return %c0_i32, %c0_i32_0, %1, %c0_i32_1 : i32, i32, i32, i32
  }
  func.func @transform_1(%arg0: i32, %arg1: i32) -> (i32, i32, i32) {
    %c0_i32 = arith.constant 0 : i32
    %c0_i32_0 = arith.constant 0 : i32
    %c0_i32_1 = arith.constant 0 : i32
    return %arg0, %c0_i32, %c0_i32_0 : i32, i32, i32
  }
}

</mosaic_0001>

<bundles_post_ra>
// kernel: tpu_custom_call.1
= control target key start
LH: loop header
LB: loop body
LE: loop exit
PB: predicated region body
PF: predicated region fallthrough
CT: control target
= control target key end

     0   :  { %6 = vsyncpa [#allocation3], 0  ;;  %s198_s0 = inlined_call_operand.hbm [shape: f32[2,4,8,128], index: 0, kind: input, shape index: {}]   ;;  %s199_s1 = inlined_call_operand.hbm [shape: f32[1,8,128], index: 1, kind: output, shape index: {}]  }
   0x1   :  { %7 = vsyncpa [#allocation4], 0  ;;  %s160_s6 = smov [#allocation2]   ;;  %s112_s10 = scalar_lea.hbm %s198_s0, 1024 }
   0x2   :  { %s16_s7 = sshll.u32 %s160_s6, 4  ;;  %p113_p0 = scmp.ne.s32.totalorder %s198_s0, %s112_s10  ;;  %s17_s7 = int_to_ptr.vmem [resolvable:$true] %s16_s7 }
   0x3   :  { %p116_p1 = scmp.lt.u32.totalorder %s112_s10, %s198_s0 }
   0x5   :  { %p118_p2 = pnand %p116_p1, %p113_p0 }
   0x7   :  { %121 = shalt.err (!%p118_p2)
}
   0x8   :  { %s122_s15 = scalar_lea.vmem %s17_s7, 1024  ;;  %p127_p4 = scmp.lt.s32.totalorder %s17_s7, %s17_s7 }
   0x9   :  { %p123_p3 = scmp.ne.s32.totalorder %s17_s7, %s122_s15  ;;  %p128_p5 = scmp.lt.s32.totalorder %s122_s15, %s122_s15 }
   0xb   :  { %p129_p6 = por %p128_p5, %p127_p4 }
   0xd   :  { %p130_p7 = pnand %p129_p6, %p123_p3 }
   0xf   :  { %133 = shalt.err (!%p130_p7)
}
  0x10   :  { %s161_s16 = smov 128   ;;  %s162_s17 = smov 8  }
  0x11   :  { %22 = dma.hbm_to_vmem [thread:$0]  %s198_s0, 1024, %s17_s7, [#allocation3], %s161_s16, %s161_s16, %s162_s17  }
  0x12   :  { %156 = dma.done.wait [#allocation3], 1024  }
  0x13   :  { %157 = vsyncadd [#allocation3], 4294966272  ;;  %v32_v0 = vld [vmem:[#allocation2] sm:$0xff]  ;;  %v33_v1 = vld [vmem:[#allocation2 + $0x8] sm:$0xff]  ;;  %s163_s0 = smov [#allocation5]  }
  0x14   :  { %v34_v2 = vld [vmem:[#allocation2 + $0x10] sm:$0xff]  ;;  %v36_v3 = vld [vmem:[#allocation2 + $0x20] sm:$0xff]  ;;  %v37_v4 = vld [vmem:[#allocation2 + $0x28] sm:$0xff]  ;;  %v40_v5 = vadd.f32 %v33_v1, %v32_v0  ;;  %v46_v6 = vmul.f32 %v32_v0, %v32_v0  ;;  %v47_v7 = vmul.f32 %v33_v1, %v33_v1  ;;  %s94_s20 = sshll.u32 %s163_s0, 4  ;;  %s95_s20 = int_to_ptr.vmem [resolvable:$true] %s94_s20 }
  0x15   :  { %v48_v8 = vmul.f32 %v34_v2, %v34_v2  ;;  %v35_v9 = vld [vmem:[#allocation2 + $0x18] sm:$0xff]  ;;  %v38_v10 = vld [vmem:[#allocation2 + $0x30] sm:$0xff]  ;;  %v43_v11 = vadd.f32 %v37_v4, %v36_v3  ;;  %v50_v12 = vmul.f32 %v36_v3, %v36_v3  ;;  %v51_v13 = vmul.f32 %v37_v4, %v37_v4  ;;  %s134_s21 = scalar_lea.vmem %s95_s20, 128  ;;  %p139_p9 = scmp.lt.s32.totalorder %s95_s20, %s95_s20 }
  0x16   :  { %v39_v14 = vld [vmem:[#allocation2 + $0x38] sm:$0xff]  ;;  %v41_v15 = vadd.f32 %v40_v5, %v34_v2  ;;  %v49_v16 = vmul.f32 %v35_v9, %v35_v9  ;;  %v52_v17 = vmul.f32 %v38_v10, %v38_v10  ;;  %v54_v18 = vadd.f32 %v47_v7, %v46_v6  ;;  %p135_p8 = scmp.ne.s32.totalorder %s95_s20, %s134_s21  ;;  %p140_p10 = scmp.lt.s32.totalorder %s134_s21, %s134_s21 }
  0x17   :  { %v44_v19 = vadd.f32 %v43_v11, %v38_v10  ;;  %v53_v20 = vmul.f32 %v39_v14, %v39_v14  ;;  %v57_v21 = vadd.f32 %v51_v13, %v50_v12 }
  0x18   :  { %v42_v22 = vadd.f32 %v41_v15, %v35_v9  ;;  %v55_v23 = vadd.f32 %v54_v18, %v48_v8  ;;  %p141_p11 = por %p140_p10, %p139_p9 }
  0x19   :  { %v45_v24 = vadd.f32 %v44_v19, %v39_v14  ;;  %v58_v25 = vadd.f32 %v57_v21, %v52_v17 }
  0x1a   :  { %v56_v26 = vadd.f32 %v55_v23, %v49_v16  ;;  %v60_v27 = vmul.f32 %v42_v22, %v42_v22  ;;  %p142_p12 = pnand %p141_p11, %p135_p8 }
  0x1b   :  { %v59_v28 = vadd.f32 %v58_v25, %v53_v20  ;;  %v61_v29 = vmul.f32 %v45_v24, %v45_v24 }
  0x1c   :  { %v62_v30 = vmul.f32 0.25, %v60_v27 }
  0x1d   :  { %v63_v31 = vmul.f32 0.25, %v61_v29 }
  0x1e   :  { %v64_v32 = vsub.f32 %v56_v26, %v62_v30 }
  0x1f   :  { %v65_v33 = vsub.f32 %v59_v28, %v63_v31 }
  0x20   :  { %v66_v34 = vmul.f32 0.33333334, %v64_v32 }
  0x21   :  { %v67_v35 = vmul.f32 0.33333334, %v65_v33 }
  0x22   :  { %v68_v36 = vmax.f32 %v66_v34, 0.0 }
  0x23   :  { %v69_v37 = vmax.f32 %v67_v35, 0.0 }
  0x24   :  { %108 = vrsqrt.f32 %v68_v36  ;;  %vm72_vm0 = vcmp.eq.f32.partialorder %v68_v36, inf  ;;  %v75_v39 = vand.u32 2147483648, %v68_v36  ;;  %vm74_vm1 = vcmp.eq.f32.partialorder %v68_v36, 0.0 }
  0x25   :  { %110 = vrsqrt.f32 %v69_v37  ;;  %vm79_vm2 = vcmp.eq.f32.partialorder %v69_v37, inf  ;;  %v82_v42 = vand.u32 2147483648, %v69_v37  ;;  %vm81_vm3 = vcmp.eq.f32.partialorder %v69_v37, 0.0 }
  0x2e   :  { %v109_v38 = vpop.eup %108 }
  0x2f   :  { %v111_v40 = vpop.eup %110  ;;  %v71_v41 = vmul.f32 %v109_v38, %v68_v36 }
  0x30   :  { %v78_v43 = vmul.f32 %v111_v40, %v69_v37 }
  0x31   :  { %v73_v44 = vsel %vm72_vm0, %v68_v36, %v71_v41 }
  0x32   :  { %v76_v45 = vsel %vm74_vm1, %v75_v39, %v73_v44  ;;  %v80_v46 = vsel %vm79_vm2, %v69_v37, %v78_v43 }
  0x33   :  { %v83_v47 = vsel %vm81_vm3, %v82_v42, %v80_v46 }
  0x34   :  { %v85_v48 = vadd.f32 %v83_v47, %v76_v45 }
  0x36   :  { %87 = vst [vmem:[#allocation5] sm:$0xff] %v85_v48 }
  0x37   :  { %145 = shalt.err (!%p142_p12)
}
  0x38   :  { %s146_s24 = scalar_lea.hbm %s199_s1, 128 }
  0x39   :  { %p147_p13 = scmp.ne.s32.totalorder %s199_s1, %s146_s24  ;;  %p150_p0 = scmp.lt.u32.totalorder %s146_s24, %s199_s1 }
  0x3b   :  { %p152_p1 = pnand %p150_p0, %p147_p13 }
  0x3d   :  { %155 = shalt.err (!%p152_p1)
}
  0x3e   :  { %97 = dma.vmem_to_hbm [thread:$0]  %s95_s20, 128, %s199_s1, [#allocation4]  }
  0x3f   :  { %158 = dma.done.wait [#allocation4], 128  }
  0x40   :  { %159 = vsyncadd [#allocation4], 4294967168 }
  0x41   :  { %101 = vsyncpa [#allocation3], 1 }
  0x42   :  { %102 = vsyncpa [#allocation4], 1 }

</bundles_post_ra>
